<compile_context>
chip_gen: v6e
topology: v6e:2x2x1
jax: 0.10.0
libtpu: 0.0.40
codegen_flags: <defaults>
</compile_context>

<pallas_src>
import jax
import jax.numpy as jnp
from jax.experimental import pallas as pl
from jax.experimental.pallas import tpu as pltpu


def _round_up(x, m):
    return (x + m - 1) // m * m


def _cdiv(a, b):
    return -(-a // b)


def _vmem_budget_bytes():
    """Usable VMEM budget: physical capacity minus headroom for Mosaic internals."""
    try:
        cap = int(pltpu.get_tpu_info().vmem_capacity_bytes)
    except Exception:
        cap = 64 * 1024 * 1024  # conservative fallback: v7x per-TC VMEM
    headroom = 16 * 1024 * 1024
    # ~48 MiB on v7x (64 MiB/TC); up to ~100 MiB of the 128 MiB on v5e/v6e.
    return int(max(24 * 1024 * 1024, min(cap - headroom, 100 * 1024 * 1024)))


def _embeddings_and_features_kernel(
    emb_ref,    # (TB, D_in)       streamed embeddings tile (f32 or bf16)
    feat_ref,   # (TB, NUM_FEAT)   streamed scalar-features tile (f32)
    w1_ref,     # (D_in, HID)      resident (f32 or bf16)
    b1_ref,     # (1, HID)         resident f32
    w2f_ref,    # (1, HID)         resident f32: row(w2 @ wf_e)
    wff_ref,    # (1, NUM_FEAT)    resident f32: row(wf_f)
    c_ref,      # (1, 1) in SMEM   folded scalar bias: b2 @ wf_e + bf
    out_ref,    # (TB, 1)
):
    # nn_embeddings first Linear + ReLU (the only MXU matmul, f32 accumulation).
    h = jnp.dot(emb_ref[...], w1_ref[...], preferred_element_type=jnp.float32)
    h = jnp.maximum(h + b1_ref[...], 0.0)

    # Second Linear folded into the final head. The two skinny (N=1) dots run on the
    # VPU/XLU (broadcast multiply + lane reduce) instead of occupying the MXU.
    logit_e = jnp.sum(h * w2f_ref[...], axis=-1, keepdims=True)
    logit_f = jnp.sum(feat_ref[...] * wff_ref[...], axis=-1, keepdims=True)
    logits = logit_e + logit_f + c_ref[0, 0]

    out_ref[...] = jax.nn.sigmoid(logits)


def embeddings_and_features_nn(embeddings, features, params, *, tb=None):
    """embeddings: (B, C, H, W); features: (B, num_features). Returns (B, 1) f32."""
    B = embeddings.shape[0]
    assert features.shape[0] == B, "Input must have same batch dimension"
    # TODO(synk): embeddings_dropout (F.dropout2d) is training-time stochastic; the
    # module is exercised with embeddings_dropout=None, so that branch is skipped.

    # Stream embeddings in their native dtype when they are already bf16 in HBM
    # (halves the dominant HBM traffic). Otherwise stream f32: a standalone wrapper
    # side f32->bf16 cast would be its own HBM pass and a net loss.
    stream_dtype = jnp.bfloat16 if embeddings.dtype == jnp.bfloat16 else jnp.float32
    emb_flat = embeddings.reshape(B, -1)          # row-major NCHW flatten (free)
    if emb_flat.dtype != stream_dtype:
        emb_flat = emb_flat.astype(stream_dtype)  # no-op for f32 inputs
    feat = features.astype(jnp.float32)

    d_in = emb_flat.shape[1]
    num_feat = feat.shape[1]
    hid = params["w1"].shape[1]
    itemsize = jnp.dtype(stream_dtype).itemsize

    # Fold the activation-free second Linear into the head (exact up to f32 rounding).
    w2f = (params["w2"].astype(jnp.float32)
           @ params["wf_e"].astype(jnp.float32)).reshape(1, hid)
    wff = params["wf_f"].astype(jnp.float32).reshape(1, num_feat)
    c = (params["b2"].astype(jnp.float32) @ params["wf_e"].astype(jnp.float32)
         + params["bf"].astype(jnp.float32)).reshape(1, 1)
    w1 = params["w1"].astype(stream_dtype)
    b1 = params["b1"].astype(jnp.float32)

    weight_bytes = d_in * hid * itemsize + (2 * hid + num_feat) * 4
    budget = _vmem_budget_bytes()

    # Batch tile: multiple of 8 (sublane), sized so double-buffered streamed tiles +
    # resident weights fit the generation-aware VMEM budget; capped at 2048 where the
    # per-step overhead is already <10% of the per-step DMA.
    per_row = 2 * (d_in * itemsize + num_feat * 4 + 4)   # double-buffered in + out
    if tb is None:
        avail = budget - weight_bytes - (2 << 20)
        tb = min(2048, max(8, avail // per_row))
    # TODO(synk): if d_in ever grows so large that even tb=8 exceeds the budget, split
    # d_in over a second "arbitrary" grid axis with an f32 accumulator scratch instead
    # of shrinking the batch tile.
    tb = max(8, (int(tb) // 8) * 8)
    tb = min(tb, _round_up(B, 8))

    num_tiles = _cdiv(B, tb)
    # v7x has 2 TensorCores: give the "parallel" batch axis >=2 steps when B allows it.
    if num_tiles == 1 and B > 8:
        tb = _round_up(_cdiv(B, 2), 8)
        num_tiles = _cdiv(B, tb)

    need = 2 * tb * (d_in * itemsize + num_feat * 4 + 4) + weight_bytes
    vmem_limit = int(min(budget, max(32 * 1024 * 1024, need + (8 << 20))))

    cost = pl.CostEstimate(
        flops=2 * B * d_in * hid + 4 * B * (hid + num_feat),
        transcendentals=B,
        bytes_accessed=B * (d_in * itemsize + num_feat * 4 + 4) + weight_bytes,
    )

    out = pl.pallas_call(
        _embeddings_and_features_kernel,
        out_shape=jax.ShapeDtypeStruct((B, 1), jnp.float32),
        grid=(num_tiles,),
        in_specs=[
            pl.BlockSpec((tb, d_in), lambda i: (i, 0)),          # streamed embeddings
            pl.BlockSpec((tb, num_feat), lambda i: (i, 0)),      # streamed features
            pl.BlockSpec((d_in, hid), lambda i: (0, 0)),         # resident weights
            pl.BlockSpec((1, hid), lambda i: (0, 0)),
            pl.BlockSpec((1, hid), lambda i: (0, 0)),
            pl.BlockSpec((1, num_feat), lambda i: (0, 0)),
            pl.BlockSpec(memory_space=pltpu.MemorySpace.SMEM),   # folded scalar bias
        ],
        out_specs=pl.BlockSpec((tb, 1), lambda i: (i, 0)),
        compiler_params=pltpu.CompilerParams(
            dimension_semantics=("parallel",),
            vmem_limit_bytes=vmem_limit,
        ),
        cost_estimate=cost,
    )(emb_flat, feat, w1, b1, w2f, wff, c)

    return out


def make_params(key, d_in, hid, nn_output_dim, num_features):
    ks = jax.random.split(key, 6)
    scale1 = 1.0 / jnp.sqrt(d_in)
    scale2 = 1.0 / jnp.sqrt(hid)
    scalef = 1.0 / jnp.sqrt(nn_output_dim + num_features)
    wf = jax.random.uniform(ks[4], (nn_output_dim + num_features, 1),
                            minval=-scalef, maxval=scalef, dtype=jnp.float32)
    return {
        "w1": jax.random.uniform(ks[0], (d_in, hid), minval=-scale1, maxval=scale1,
                                 dtype=jnp.float32),
        "b1": jax.random.uniform(ks[1], (1, hid), minval=-scale1, maxval=scale1,
                                 dtype=jnp.float32),
        "w2": jax.random.uniform(ks[2], (hid, nn_output_dim), minval=-scale2,
                                 maxval=scale2, dtype=jnp.float32),
        "b2": jax.random.uniform(ks[3], (1, nn_output_dim), minval=-scale2,
                                 maxval=scale2, dtype=jnp.float32),
        # final Linear(nn_output_dim + num_features, 1) split into the two concat halves
        "wf_e": wf[:nn_output_dim, :],
        "wf_f": wf[nn_output_dim:, :],
        "bf": jax.random.uniform(ks[5], (1, 1), minval=-scalef, maxval=scalef,
                                 dtype=jnp.float32),
    }


if __name__ == "__main__":
    C, H, W = 4, 16, 16
    HID, NN_OUT, NUM_FEAT = 32, 16, 8
    D_IN = C * H * W

    key = jax.random.PRNGKey(0)
    k_emb, k_feat, k_par = jax.random.split(key, 3)
    params = make_params(k_par, D_IN, HID, NN_OUT, NUM_FEAT)

    def reference(embeddings, features):
        # Pure-JAX reference in the original (unfolded) operation order.
        emb_flat = embeddings.reshape(embeddings.shape[0], -1).astype(jnp.float32)
        h = jnp.maximum(emb_flat @ params["w1"] + params["b1"], 0.0)
        x_embs = h @ params["w2"] + params["b2"]
        x = jnp.concatenate([x_embs, features.astype(jnp.float32)], axis=1)
        wf = jnp.concatenate([params["wf_e"], params["wf_f"]], axis=0)
        return jax.nn.sigmoid(x @ wf + params["bf"])

    # Small batch (single grid step), exact f32 semantics.
    B = 2
    embeddings = jax.random.normal(k_emb, (B, C, H, W), dtype=jnp.float32)
    features = jax.random.normal(k_feat, (B, NUM_FEAT), dtype=jnp.float32)
    out = jax.block_until_ready(embeddings_and_features_nn(embeddings, features, params))
    assert out.shape == (B, 1)
    assert jnp.allclose(out, reference(embeddings, features), atol=1e-5)

    # Ragged larger batch: exercises the multi-step "parallel" grid and the Pallas
    # partial final block (no wrapper-side pad of the embeddings any more).
    B2 = 20
    emb2 = jax.random.normal(jax.random.PRNGKey(1), (B2, C, H, W), dtype=jnp.float32)
    feat2 = jax.random.normal(jax.random.PRNGKey(2), (B2, NUM_FEAT), dtype=jnp.float32)
    out2 = jax.block_until_ready(embeddings_and_features_nn(emb2, feat2, params))
    assert out2.shape == (B2, 1)
    assert jnp.allclose(out2, reference(emb2, feat2), atol=1e-5)

    # Native-bf16 embeddings in HBM: streamed as bf16 (f32 accumulation), looser tol.
    emb_bf16 = embeddings.astype(jnp.bfloat16)
    out_bf16 = jax.block_until_ready(
        embeddings_and_features_nn(emb_bf16, features, params))
    assert out_bf16.shape == (B, 1)
    assert jnp.allclose(out_bf16, reference(embeddings, features), atol=2e-2)

    print("KERNEL_OK")
</pallas_src>

<mosaic_0001>
module attributes {stable_mosaic.version = 11 : i64} {
  func.func @_embeddings_and_features_kernel(%arg0: i32, %arg1: memref<8x1024xf32, #tpu.memory_space<vmem>>, %arg2: memref<8x8xf32, #tpu.memory_space<vmem>>, %arg3: memref<1024x32xf32, #tpu.memory_space<vmem>>, %arg4: memref<1x32xf32, #tpu.memory_space<vmem>>, %arg5: memref<1x32xf32, #tpu.memory_space<vmem>>, %arg6: memref<1x8xf32, #tpu.memory_space<vmem>>, %arg7: memref<1x1xf32, #tpu.memory_space<smem>>, %arg8: memref<8x1xf32, #tpu.memory_space<vmem>>) attributes {dimension_semantics = [#tpu.dimension_semantics<parallel>], iteration_bounds = array<i64: 1>, scalar_prefetch = 0 : i64, scratch_operands = 0 : i64, tpu.core_type = #tpu.core_type<tc>, window_params = [{transform_indices = @transform_0, window_bounds = array<i64: 8, 1024>}, {transform_indices = @transform_1, window_bounds = array<i64: 8, 8>}, {pipeline_mode = #tpu.pipeline_mode<synchronous>, transform_indices = @transform_2, window_bounds = array<i64: 1024, 32>}, {pipeline_mode = #tpu.pipeline_mode<synchronous>, transform_indices = @transform_3, window_bounds = array<i64: 1, 32>}, {pipeline_mode = #tpu.pipeline_mode<synchronous>, transform_indices = @transform_4, window_bounds = array<i64: 1, 32>}, {pipeline_mode = #tpu.pipeline_mode<synchronous>, transform_indices = @transform_5, window_bounds = array<i64: 1, 8>}, {transform_indices = @transform_6, window_bounds = array<i64: 1, 1>}, {transform_indices = @transform_7, window_bounds = array<i64: 8, 1>}]} {
    %c0 = arith.constant 0 : index
    %c0_0 = arith.constant 0 : index
    %0 = vector.load %arg1[%c0, %c0_0] : memref<8x1024xf32, #tpu.memory_space<vmem>>, vector<8x1024xf32>
    %c0_1 = arith.constant 0 : index
    %c0_2 = arith.constant 0 : index
    %1 = vector.load %arg3[%c0_1, %c0_2] : memref<1024x32xf32, #tpu.memory_space<vmem>>, vector<1024x32xf32>
    %cst = arith.constant dense<0.000000e+00> : vector<8x32xf32>
    %2 = tpu.matmul %0, %1, %cst {dimension_numbers = #tpu.dot_dimension_numbers<[1], [0], [0], [1], [0, 0, 1, 1], [], []>} : vector<8x1024xf32>, vector<1024x32xf32>, vector<8x32xf32> -> vector<8x32xf32>
    %c0_3 = arith.constant 0 : index
    %c0_4 = arith.constant 0 : index
    %3 = vector.load %arg4[%c0_3, %c0_4] : memref<1x32xf32, #tpu.memory_space<vmem>>, vector<1x32xf32>
    %4 = vector.broadcast %3 : vector<1x32xf32> to vector<8x32xf32>
    %5 = arith.addf %2, %4 : vector<8x32xf32>
    %cst_5 = arith.constant 0.000000e+00 : f32
    %6 = vector.broadcast %cst_5 : f32 to vector<8x32xf32>
    %7 = arith.maximumf %5, %6 : vector<8x32xf32>
    %c0_6 = arith.constant 0 : index
    %c0_7 = arith.constant 0 : index
    %8 = vector.load %arg5[%c0_6, %c0_7] : memref<1x32xf32, #tpu.memory_space<vmem>>, vector<1x32xf32>
    %9 = vector.broadcast %8 : vector<1x32xf32> to vector<8x32xf32>
    %10 = arith.mulf %7, %9 : vector<8x32xf32>
    %cst_8 = arith.constant dense<0.000000e+00> : vector<8xf32>
    %11 = vector.multi_reduction <add>, %10, %cst_8 [1] : vector<8x32xf32> to vector<8xf32>
    %12 = vector.shape_cast %11 : vector<8xf32> to vector<8x1xf32>
    %c0_9 = arith.constant 0 : index
    %c0_10 = arith.constant 0 : index
    %13 = vector.load %arg2[%c0_9, %c0_10] : memref<8x8xf32, #tpu.memory_space<vmem>>, vector<8x8xf32>
    %c0_11 = arith.constant 0 : index
    %c0_12 = arith.constant 0 : index
    %14 = vector.load %arg6[%c0_11, %c0_12] : memref<1x8xf32, #tpu.memory_space<vmem>>, vector<1x8xf32>
    %15 = vector.broadcast %14 : vector<1x8xf32> to vector<8x8xf32>
    %16 = arith.mulf %13, %15 : vector<8x8xf32>
    %cst_13 = arith.constant dense<0.000000e+00> : vector<8xf32>
    %17 = vector.multi_reduction <add>, %16, %cst_13 [1] : vector<8x8xf32> to vector<8xf32>
    %18 = vector.shape_cast %17 : vector<8xf32> to vector<8x1xf32>
    %19 = arith.addf %12, %18 : vector<8x1xf32>
    %c0_14 = arith.constant 0 : index
    %c0_15 = arith.constant 0 : index
    %20 = memref.load %arg7[%c0_14, %c0_15] : memref<1x1xf32, #tpu.memory_space<smem>>
    %21 = vector.broadcast %20 : f32 to vector<8x1xf32>
    %22 = arith.addf %19, %21 : vector<8x1xf32>
    %23 = arith.negf %22 : vector<8x1xf32>
    %24 = math.exp %23 : vector<8x1xf32>
    %cst_16 = arith.constant 1.000000e+00 : f32
    %25 = vector.broadcast %cst_16 : f32 to vector<8x1xf32>
    %26 = arith.addf %25, %24 : vector<8x1xf32>
    %27 = arith.divf %25, %26 : vector<8x1xf32>
    %c0_17 = arith.constant 0 : index
    %c0_18 = arith.constant 0 : index
    %28 = vector.load %arg8[%c0_17, %c0_18] : memref<8x1xf32, #tpu.memory_space<vmem>>, vector<8x1xf32>
    tpu.vector_store %arg8[%c0_17, %c0_18], %27 {strides = array<i32>} : memref<8x1xf32, #tpu.memory_space<vmem>>, vector<8x1xf32>,
    return
  }
  func.func @transform_0(%arg0: i32) -> (i32, i32) {
    %c0_i32 = arith.constant 0 : i32
    %c0_i32_0 = arith.constant 0 : i32
    return %arg0, %c0_i32 : i32, i32
  }
  func.func @transform_1(%arg0: i32) -> (i32, i32) {
    %c0_i32 = arith.constant 0 : i32
    %c0_i32_0 = arith.constant 0 : i32
    return %arg0, %c0_i32 : i32, i32
  }
  func.func @transform_2(%arg0: i32) -> (i32, i32) {
    %c0_i32 = arith.constant 0 : i32
    %c0_i32_0 = arith.constant 0 : i32
    %c0_i32_1 = arith.constant 0 : i32
    return %c0_i32, %c0_i32_0 : i32, i32
  }
  func.func @transform_3(%arg0: i32) -> (i32, i32) {
    %c0_i32 = arith.constant 0 : i32
    %c0_i32_0 = arith.constant 0 : i32
    %c0_i32_1 = arith.constant 0 : i32
    return %c0_i32, %c0_i32_0 : i32, i32
  }
  func.func @transform_4(%arg0: i32) -> (i32, i32) {
    %c0_i32 = arith.constant 0 : i32
    %c0_i32_0 = arith.constant 0 : i32
    %c0_i32_1 = arith.constant 0 : i32
    return %c0_i32, %c0_i32_0 : i32, i32
  }
  func.func @transform_5(%arg0: i32) -> (i32, i32) {
    %c0_i32 = arith.constant 0 : i32
    %c0_i32_0 = arith.constant 0 : i32
    %c0_i32_1 = arith.constant 0 : i32
    return %c0_i32, %c0_i32_0 : i32, i32
  }
  func.func @transform_6(%arg0: i32) -> (i32, i32) {
    %c0_i32 = arith.constant 0 : i32
    %c0_i32_0 = arith.constant 0 : i32
    %c0_i32_1 = arith.constant 0 : i32
    return %c0_i32, %c0_i32_0 : i32, i32
  }
  func.func @transform_7(%arg0: i32) -> (i32, i32) {
    %c0_i32 = arith.constant 0 : i32
    %c0_i32_0 = arith.constant 0 : i32
    return %arg0, %c0_i32 : i32, i32
  }
}

</mosaic_0001>

<bundles_post_ra>
// kernel: tpu_custom_call.1
= control target key start
LH: loop header
LB: loop body
LE: loop exit
PB: predicated region body
PF: predicated region fallthrough
CT: control target
= control target key end

     0   :  { %v778_v30 = vmov 1983009808   ;;  %v185_v32 = vlaneseq  ;;  %vm547_vm0 = vcmask 261120   ;;  %vm560_vm1 = vcmask 64512   ;;  %s1255_s0 = inlined_call_operand.vmem [shape: f32[2,1024], index: 0, kind: input, shape index: {}]   ;;  %s1256_s1 = inlined_call_operand.vmem [shape: f32[2,8], index: 1, kind: input, shape index: {}]   ;;  %s1257_s2 = inlined_call_operand.vmem [shape: f32[1024,32], index: 2, kind: input, shape index: {}]   ;;  %s1258_s3 = inlined_call_operand.vmem [shape: f32[1,32], index: 3, kind: input, shape index: {}]   ;;  %s1259_s4 = inlined_call_operand.vmem [shape: f32[1,32], index: 4, kind: input, shape index: {}]   ;;  %s1260_s5 = inlined_call_operand.vmem [shape: f32[1,8], index: 5, kind: input, shape index: {}]   ;;  %s1261_s6 = inlined_call_operand.<no memory space> [shape: f32[1,1], index: 6, kind: input, shape index: {}]   ;;  %s1262_s7 = inlined_call_operand.vmem [shape: f32[2,1], index: 7, kind: output, shape index: {}]  }
   0x1   :  { %v66_v0 = vld [vmem:[%s1257_s2 + $0xf8] sm:$0xff]  ;;  %v65_v4 = vld [vmem:[%s1257_s2 + $0xf0] sm:$0xff]  ;;  %v64_v8 = vld [vmem:[%s1257_s2 + $0xe8] sm:$0xff]  ;;  %v183_v31 = vunpack.c.l.s4 %v778_v30  ;;  %vm574_vm2 = vcmask 7168  }
   0x2   :  { %v98_v1 = vld [vmem:[%s1257_s2 + $0x1f8] sm:$0xff]  ;;  %621 = vmatprep.subr.mxu0 %v66_v0  ;;  %v97_v5 = vld [vmem:[%s1257_s2 + $0x1f0] sm:$0xff]  ;;  %v96_v9 = vld [vmem:[%s1257_s2 + $0x1e8] sm:$0xff]  ;;  %v186_v42 = vshrl.u32 %v185_v32, 7 }
   0x3   :  { %v50_v2 = vld [vmem:[%s1257_s2 + $0x78] sm:$0xff]  ;;  %656 = vmatprep.subr.mxu1 %v98_v1  ;;  %v49_v6 = vld [vmem:[%s1257_s2 + $0x70] sm:$0xff]  ;;  %v48_v10 = vld [vmem:[%s1257_s2 + $0x68] sm:$0xff]  ;;  %v184_v41 = vunpack.c.0.s8 %v183_v31 }
   0x4   :  { %v82_v3 = vld [vmem:[%s1257_s2 + $0x178] sm:$0xff]  ;;  %622 = vmatpush3.msra.mxu0 %v50_v2  ;;  %v81_v7 = vld [vmem:[%s1257_s2 + $0x170] sm:$0xff]  ;;  %v80_v11 = vld [vmem:[%s1257_s2 + $0x168] sm:$0xff] }
   0x5   :  { %657 = vmatpush3.msra.mxu1 %v82_v3  ;;  %623 = vmatprep.subr.mxu0 %v65_v4  ;;  %v63_v12 = vld [vmem:[%s1257_s2 + $0xe0] sm:$0xff]  ;;  %v62_v16 = vld [vmem:[%s1257_s2 + $0xd8] sm:$0xff]  ;;  %v61_v20 = vld [vmem:[%s1257_s2 + $0xd0] sm:$0xff]  ;;  %v969_v55 = vsub.s32 %v184_v41, %v186_v42 }
   0x6   :  { %658 = vmatprep.subr.mxu1 %v97_v5  ;;  %624 = vmatpush3.msra.mxu0 %v49_v6  ;;  %v95_v13 = vld [vmem:[%s1257_s2 + $0x1e0] sm:$0xff]  ;;  %v94_v17 = vld [vmem:[%s1257_s2 + $0x1d8] sm:$0xff]  ;;  %v93_v21 = vld [vmem:[%s1257_s2 + $0x1d0] sm:$0xff] }
   0x7   :  { %659 = vmatpush3.msra.mxu1 %v81_v7  ;;  %625 = vmatprep.subr.mxu0 %v64_v8  ;;  %v47_v14 = vld [vmem:[%s1257_s2 + $0x60] sm:$0xff]  ;;  %v46_v18 = vld [vmem:[%s1257_s2 + $0x58] sm:$0xff]  ;;  %v45_v22 = vld [vmem:[%s1257_s2 + $0x50] sm:$0xff] }
   0x8   :  { %660 = vmatprep.subr.mxu1 %v96_v9  ;;  %v79_v15 = vld [vmem:[%s1257_s2 + $0x160] sm:$0xff]  ;;  %626 = vmatpush3.msra.mxu0 %v48_v10  ;;  %v78_v19 = vld [vmem:[%s1257_s2 + $0x158] sm:$0xff]  ;;  %v77_v23 = vld [vmem:[%s1257_s2 + $0x150] sm:$0xff] }
   0x9   :  { %661 = vmatpush3.msra.mxu1 %v80_v11  ;;  %627 = vmatprep.subr.mxu0 %v63_v12  ;;  %v60_v24 = vld [vmem:[%s1257_s2 + $0xc8] sm:$0xff]  ;;  %v59_v28 = vld [vmem:[%s1257_s2 + $0xc0] sm:$0xff]  ;;  %v58_v35 = vld [vmem:[%s1257_s2 + $0xb8] sm:$0xff] }
   0xa   :  { %662 = vmatprep.subr.mxu1 %v95_v13  ;;  %628 = vmatpush3.msra.mxu0 %v47_v14  ;;  %v92_v25 = vld [vmem:[%s1257_s2 + $0x1c8] sm:$0xff]  ;;  %v91_v29 = vld [vmem:[%s1257_s2 + $0x1c0] sm:$0xff]  ;;  %v90_v36 = vld [vmem:[%s1257_s2 + $0x1b8] sm:$0xff] }
   0xb   :  { %663 = vmatpush3.msra.mxu1 %v79_v15  ;;  %629 = vmatprep.subr.mxu0 %v62_v16  ;;  %v44_v26 = vld [vmem:[%s1257_s2 + $0x48] sm:$0xff]  ;;  %v43_v33 = vld [vmem:[%s1257_s2 + $0x40] sm:$0xff]  ;;  %v42_v37 = vld [vmem:[%s1257_s2 + $0x38] sm:$0xff] }
   0xc   :  { %664 = vmatprep.subr.mxu1 %v94_v17  ;;  %630 = vmatpush3.msra.mxu0 %v46_v18  ;;  %v76_v27 = vld [vmem:[%s1257_s2 + $0x148] sm:$0xff]  ;;  %v75_v34 = vld [vmem:[%s1257_s2 + $0x140] sm:$0xff]  ;;  %v74_v38 = vld [vmem:[%s1257_s2 + $0x138] sm:$0xff] }
   0xd   :  { %665 = vmatpush3.msra.mxu1 %v78_v19  ;;  %631 = vmatprep.subr.mxu0 %v61_v20  ;;  %v57_v39 = vld [vmem:[%s1257_s2 + $0xb0] sm:$0xff]  ;;  %v56_v45 = vld [vmem:[%s1257_s2 + $0xa8] sm:$0xff]  ;;  %v55_v49 = vld [vmem:[%s1257_s2 + $0xa0] sm:$0xff] }
   0xe   :  { %666 = vmatprep.subr.mxu1 %v93_v21  ;;  %632 = vmatpush3.msra.mxu0 %v45_v22  ;;  %v89_v40 = vld [vmem:[%s1257_s2 + $0x1b0] sm:$0xff]  ;;  %v88_v46 = vld [vmem:[%s1257_s2 + $0x1a8] sm:$0xff]  ;;  %v87_v50 = vld [vmem:[%s1257_s2 + $0x1a0] sm:$0xff] }
   0xf   :  { %667 = vmatpush3.msra.mxu1 %v77_v23  ;;  %633 = vmatprep.subr.mxu0 %v60_v24  ;;  %v41_v43 = vld [vmem:[%s1257_s2 + $0x30] sm:$0xff]  ;;  %v40_v47 = vld [vmem:[%s1257_s2 + $0x28] sm:$0xff]  ;;  %v39_v51 = vld [vmem:[%s1257_s2 + $0x20] sm:$0xff] }
  0x10   :  { %668 = vmatprep.subr.mxu1 %v92_v25  ;;  %634 = vmatpush3.msra.mxu0 %v44_v26  ;;  %v73_v44 = vld [vmem:[%s1257_s2 + $0x130] sm:$0xff]  ;;  %v72_v48 = vld [vmem:[%s1257_s2 + $0x128] sm:$0xff]  ;;  %v71_v52 = vld [vmem:[%s1257_s2 + $0x120] sm:$0xff] }
  0x11   :  { %669 = vmatpush3.msra.mxu1 %v76_v27  ;;  %635 = vmatprep.subr.mxu0 %v59_v28  ;;  %v54_v53 = vld [vmem:[%s1257_s2 + $0x98] sm:$0xff]  ;;  %v762_v57 = vld [vmem:[%s1255_s0] ss:$16 sps:$4 sm:$0xff]   ;;  %v766_v60 = vld [vmem:[%s1255_s0 + $0x4] ss:$16 sps:$4 sm:$0xff]  }
  0x12   :  { %670 = vmatprep.subr.mxu1 %v91_v29  ;;  %636 = vmatpush3.msra.mxu0 %v43_v33  ;;  %v86_v54 = vld [vmem:[%s1257_s2 + $0x198] sm:$0xff]  ;;  %v764_v58 = vld [vmem:[%s1255_s0 + $0x20] ss:$16 sps:$4 sm:$0xff]   ;;  %v767_v61 = vld [vmem:[%s1255_s0 + $0x24] ss:$16 sps:$4 sm:$0xff]   ;;  %v188_v0 = vrot.slane %v762_v57, %v969_v55  ;;  %v195_v6 = vrot.slane %v766_v60, %v969_v55 }
  0x13   :  { %671 = vmatpush3.msra.mxu1 %v75_v34  ;;  %637 = vmatprep.subr.mxu0 %v58_v35  ;;  %v38_v56 = vld [vmem:[%s1257_s2 + $0x18] sm:$0xff]  ;;  %v53_v62 = vld [vmem:[%s1257_s2 + $0x90] sm:$0xff]  ;;  %v202_v1 = vrot.slane %v764_v58, %v969_v55  ;;  %v52_v4 = vld [vmem:[%s1257_s2 + $0x88] sm:$0xff]  ;;  %v209_v7 = vrot.slane %v767_v61, %v969_v55 }
  0x14   :  { %672 = vmatprep.subr.mxu1 %v90_v36  ;;  %638 = vmatpush3.msra.mxu0 %v42_v37  ;;  %v70_v59 = vld [vmem:[%s1257_s2 + $0x118] sm:$0xff]  ;;  %v85_v63 = vld [vmem:[%s1257_s2 + $0x190] sm:$0xff]  ;;  %v84_v5 = vld [vmem:[%s1257_s2 + $0x188] sm:$0xff] }
  0x15   :  { %673 = vmatpush3.msra.mxu1 %v74_v38  ;;  %639 = vmatprep.subr.mxu0 %v57_v39  ;;  %v37_v2 = vld [vmem:[%s1257_s2 + $0x10] sm:$0xff]  ;;  %v36_v8 = vld [vmem:[%s1257_s2 + $0x8] sm:$0xff]  ;;  %v51_v10 = vld [vmem:[%s1257_s2 + $0x80] sm:$0xff]  ;;  %v211_v12 = vcombine.high %v188_v0, %v202_v1  ;;  %v210_v14 = vcombine.low %v188_v0, %v202_v1  ;;  %v213_v16 = vcombine.high %v195_v6, %v209_v7 }
  0x16   :  { %674 = vmatprep.subr.mxu1 %v89_v40  ;;  %640 = vmatpush3.msra.mxu0 %v41_v43  ;;  %v69_v3 = vld [vmem:[%s1257_s2 + $0x110] sm:$0xff]  ;;  %v68_v9 = vld [vmem:[%s1257_s2 + $0x108] sm:$0xff]  ;;  %v83_v11 = vld [vmem:[%s1257_s2 + $0x180] sm:$0xff]  ;;  %v212_v18 = vcombine.low %v195_v6, %v209_v7 }
  0x17   :  { %675 = vmatpush3.msra.mxu1 %v73_v44  ;;  %641 = vmatprep.subr.mxu0 %v56_v45  ;;  %v35_v13 = vld [vmem:[%s1257_s2] sm:$0xff]  ;;  %v130_v17 = vld [vmem:[%s1257_s2 + $0x2f8] sm:$0xff]  ;;  %v129_v22 = vld [vmem:[%s1257_s2 + $0x2f0] sm:$0xff] }
  0x18   :  { %676 = vmatprep.subr.mxu1 %v88_v46  ;;  %642 = vmatpush3.msra.mxu0 %v40_v47  ;;  %v67_v15 = vld [vmem:[%s1257_s2 + $0x100] sm:$0xff]  ;;  %v162_v19 = vld [vmem:[%s1257_s2 + $0x3f8] sm:$0xff]  ;;  %v161_v23 = vld [vmem:[%s1257_s2 + $0x3f0] sm:$0xff] }
  0x19   :  { %677 = vmatpush3.msra.mxu1 %v72_v48  ;;  %643 = vmatprep.subr.mxu0 %v55_v49  ;;  %v114_v20 = vld [vmem:[%s1257_s2 + $0x278] sm:$0xff]  ;;  %v113_v24 = vld [vmem:[%s1257_s2 + $0x270] sm:$0xff]  ;;  %v128_v26 = vld [vmem:[%s1257_s2 + $0x2e8] sm:$0xff] }
  0x1a   :  { %678 = vmatprep.subr.mxu1 %v87_v50  ;;  %644 = vmatpush3.msra.mxu0 %v39_v51  ;;  %v146_v21 = vld [vmem:[%s1257_s2 + $0x378] sm:$0xff]  ;;  %v145_v25 = vld [vmem:[%s1257_s2 + $0x370] sm:$0xff]  ;;  %v160_v27 = vld [vmem:[%s1257_s2 + $0x3e8] sm:$0xff] }
  0x1b   :  { %679 = vmatpush3.msra.mxu1 %v71_v52  ;;  %645 = vmatprep.subr.mxu0 %v54_v53  ;;  %v112_v28 = vld [vmem:[%s1257_s2 + $0x268] sm:$0xff]  ;;  %v127_v30 = vld [vmem:[%s1257_s2 + $0x2e0] sm:$0xff]  ;;  %v126_v34 = vld [vmem:[%s1257_s2 + $0x2d8] sm:$0xff] }
  0x1c   :  { %680 = vmatprep.subr.mxu1 %v86_v54  ;;  %646 = vmatpush3.msra.mxu0 %v38_v56  ;;  %v144_v29 = vld [vmem:[%s1257_s2 + $0x368] sm:$0xff]  ;;  %v159_v31 = vld [vmem:[%s1257_s2 + $0x3e0] sm:$0xff]  ;;  %v158_v35 = vld [vmem:[%s1257_s2 + $0x3d8] sm:$0xff] }
  0x1d   :  { %681 = vmatpush3.msra.mxu1 %v70_v59  ;;  %647 = vmatprep.subr.mxu0 %v53_v62  ;;  %v111_v32 = vld [vmem:[%s1257_s2 + $0x260] sm:$0xff]  ;;  %v110_v36 = vld [vmem:[%s1257_s2 + $0x258] sm:$0xff]  ;;  %v125_v38 = vld [vmem:[%s1257_s2 + $0x2d0] sm:$0xff] }
  0x1e   :  { %682 = vmatprep.subr.mxu1 %v85_v63  ;;  %648 = vmatpush3.msra.mxu0 %v37_v2  ;;  %v143_v33 = vld [vmem:[%s1257_s2 + $0x360] sm:$0xff]  ;;  %v142_v37 = vld [vmem:[%s1257_s2 + $0x358] sm:$0xff]  ;;  %v157_v39 = vld [vmem:[%s1257_s2 + $0x3d0] sm:$0xff] }
  0x1f   :  { %683 = vmatpush3.msra.mxu1 %v69_v3  ;;  %649 = vmatprep.subr.mxu0 %v52_v4  ;;  %v109_v40 = vld [vmem:[%s1257_s2 + $0x250] sm:$0xff]  ;;  %v124_v42 = vld [vmem:[%s1257_s2 + $0x2c8] sm:$0xff]  ;;  %v123_v46 = vld [vmem:[%s1257_s2 + $0x2c0] sm:$0xff] }
  0x20   :  { %684 = vmatprep.subr.mxu1 %v84_v5  ;;  %650 = vmatpush3.msra.mxu0 %v36_v8  ;;  %v141_v41 = vld [vmem:[%s1257_s2 + $0x350] sm:$0xff]  ;;  %v156_v43 = vld [vmem:[%s1257_s2 + $0x3c8] sm:$0xff]  ;;  %v155_v47 = vld [vmem:[%s1257_s2 + $0x3c0] sm:$0xff] }
  0x21   :  { %685 = vmatpush3.msra.mxu1 %v68_v9  ;;  %651 = vmatprep.subr.mxu0 %v51_v10  ;;  %v108_v44 = vld [vmem:[%s1257_s2 + $0x248] sm:$0xff]  ;;  %v107_v48 = vld [vmem:[%s1257_s2 + $0x240] sm:$0xff]  ;;  %v122_v50 = vld [vmem:[%s1257_s2 + $0x2b8] sm:$0xff] }
  0x22   :  { %686 = vmatprep.subr.mxu1 %v83_v11  ;;  %652 = vmatpush3.msra.mxu0 %v35_v13  ;;  %v140_v45 = vld [vmem:[%s1257_s2 + $0x348] sm:$0xff]  ;;  %v139_v49 = vld [vmem:[%s1257_s2 + $0x340] sm:$0xff]  ;;  %v154_v51 = vld [vmem:[%s1257_s2 + $0x3b8] sm:$0xff] }
  0x23   :  { %322 = vmatprep.mubr.f32.mxu0 %v211_v12  ;;  %687 = vmatpush3.msra.mxu1 %v67_v15  ;;  %v106_v52 = vld [vmem:[%s1257_s2 + $0x238] sm:$0xff]  ;;  %v121_v54 = vld [vmem:[%s1257_s2 + $0x2b0] sm:$0xff]  ;;  %v120_v59 = vld [vmem:[%s1257_s2 + $0x2a8] sm:$0xff] }
  0x24   :  { %323 = vmatmul.mubr.f32.vlgmr.msra.gmra.mxu0 %v210_v14  ;;  %392 = vmatprep.mubr.f32.mxu1 %v213_v16  ;;  %v138_v53 = vld [vmem:[%s1257_s2 + $0x338] sm:$0xff]  ;;  %v153_v56 = vld [vmem:[%s1257_s2 + $0x3b0] sm:$0xff]  ;;  %v152_v60 = vld [vmem:[%s1257_s2 + $0x3a8] sm:$0xff] }
  0x25   :  { %691 = vmatprep.subr.mxu0 %v130_v17  ;;  %726 = vmatprep.subr.mxu1 %v162_v19  ;;  %v105_v57 = vld [vmem:[%s1257_s2 + $0x230] sm:$0xff]  ;;  %v104_v61 = vld [vmem:[%s1257_s2 + $0x228] sm:$0xff]  ;;  %v119_v63 = vld [vmem:[%s1257_s2 + $0x2a0] sm:$0xff] }
  0x26   :  { %393 = vmatmul.mubr.f32.vlgmr.msra.gmra.mxu1 %v212_v18  ;;  %692 = vmatpush3.msra.mxu0 %v114_v20  ;;  %v137_v58 = vld [vmem:[%s1257_s2 + $0x330] sm:$0xff]  ;;  %v136_v62 = vld [vmem:[%s1257_s2 + $0x328] sm:$0xff]  ;;  %v151_v0 = vld [vmem:[%s1257_s2 + $0x3a0] sm:$0xff] }
  0x27   :  { %727 = vmatpush3.msra.mxu1 %v146_v21  ;;  %693 = vmatprep.subr.mxu0 %v129_v22  ;;  %v103_v1 = vld [vmem:[%s1257_s2 + $0x220] sm:$0xff]  ;;  %v768_v2 = vld [vmem:[%s1255_s0 + $0x8] ss:$16 sps:$4 sm:$0xff]   ;;  %v772_v5 = vld [vmem:[%s1255_s0 + $0xc] ss:$16 sps:$4 sm:$0xff]  }
  0x28   :  { %728 = vmatprep.subr.mxu1 %v161_v23  ;;  %694 = vmatpush3.msra.mxu0 %v113_v24  ;;  %v770_v3 = vld [vmem:[%s1255_s0 + $0x28] ss:$16 sps:$4 sm:$0xff]   ;;  %v135_v4 = vld [vmem:[%s1257_s2 + $0x320] sm:$0xff]  ;;  %v773_v6 = vld [vmem:[%s1255_s0 + $0x2c] ss:$16 sps:$4 sm:$0xff]   ;;  %v224_v13 = vrot.slane %v768_v2, %v969_v55  ;;  %v231_v17 = vrot.slane %v772_v5, %v969_v55 }
  0x29   :  { %729 = vmatpush3.msra.mxu1 %v145_v25  ;;  %695 = vmatprep.subr.mxu0 %v128_v26  ;;  %v118_v7 = vld [vmem:[%s1257_s2 + $0x298] sm:$0xff]  ;;  %v117_v11 = vld [vmem:[%s1257_s2 + $0x290] sm:$0xff]  ;;  %v238_v14 = vrot.slane %v770_v3, %v969_v55  ;;  %v245_v18 = vrot.slane %v773_v6, %v969_v55  ;;  %v116_v19 = vld [vmem:[%s1257_s2 + $0x288] sm:$0xff] }
  0x2a   :  { %730 = vmatprep.subr.mxu1 %v160_v27  ;;  %696 = vmatpush3.msra.mxu0 %v112_v28  ;;  %v150_v8 = vld [vmem:[%s1257_s2 + $0x398] sm:$0xff]  ;;  %v149_v12 = vld [vmem:[%s1257_s2 + $0x390] sm:$0xff]  ;;  %v148_v20 = vld [vmem:[%s1257_s2 + $0x388] sm:$0xff] }
  0x2b   :  { %731 = vmatpush3.msra.mxu1 %v144_v29  ;;  %697 = vmatprep.subr.mxu0 %v127_v30  ;;  %v102_v9 = vld [vmem:[%s1257_s2 + $0x218] sm:$0xff]  ;;  %v101_v15 = vld [vmem:[%s1257_s2 + $0x210] sm:$0xff]  ;;  %v100_v21 = vld [vmem:[%s1257_s2 + $0x208] sm:$0xff]  ;;  %v247_v24 = vcombine.high %v224_v13, %v238_v14  ;;  %v249_v26 = vcombine.high %v231_v17, %v245_v18  ;;  %v246_v28 = vcombine.low %v224_v13, %v238_v14 }
  0x2c   :  { %732 = vmatprep.subr.mxu1 %v159_v31  ;;  %698 = vmatpush3.msra.mxu0 %v111_v32  ;;  %v134_v10 = vld [vmem:[%s1257_s2 + $0x318] sm:$0xff]  ;;  %v133_v16 = vld [vmem:[%s1257_s2 + $0x310] sm:$0xff]  ;;  %v132_v55 = vld [vmem:[%s1257_s2 + $0x308] sm:$0xff]  ;;  %v248_v29 = vcombine.low %v231_v17, %v245_v18 }
  0x2d   :  { %733 = vmatpush3.msra.mxu1 %v143_v33  ;;  %699 = vmatprep.subr.mxu0 %v126_v34  ;;  %v115_v22 = vld [vmem:[%s1257_s2 + $0x280] sm:$0xff] }
  0x2e   :  { %734 = vmatprep.subr.mxu1 %v158_v35  ;;  %700 = vmatpush3.msra.mxu0 %v110_v36  ;;  %v147_v23 = vld [vmem:[%s1257_s2 + $0x380] sm:$0xff] }
  0x2f   :  { %735 = vmatpush3.msra.mxu1 %v142_v37  ;;  %701 = vmatprep.subr.mxu0 %v125_v38  ;;  %v99_v25 = vld [vmem:[%s1257_s2 + $0x200] sm:$0xff] }
  0x30   :  { %736 = vmatprep.subr.mxu1 %v157_v39  ;;  %702 = vmatpush3.msra.mxu0 %v109_v40  ;;  %v131_v27 = vld [vmem:[%s1257_s2 + $0x300] sm:$0xff] }
  0x31   :  { %737 = vmatpush3.msra.mxu1 %v141_v41  ;;  %703 = vmatprep.subr.mxu0 %v124_v42  ;;  %v617_v34 = vld [vmem:[%s1258_s3] ss:$0 sm:$0xff] }
  0x32   :  { %738 = vmatprep.subr.mxu1 %v156_v43  ;;  %704 = vmatpush3.msra.mxu0 %v108_v44 }
  0x33   :  { %739 = vmatpush3.msra.mxu1 %v140_v45  ;;  %705 = vmatprep.subr.mxu0 %v123_v46 }
  0x34   :  { %740 = vmatprep.subr.mxu1 %v155_v47  ;;  %706 = vmatpush3.msra.mxu0 %v107_v48  ;;  %v618_v47 = vld [vmem:[%s1259_s4] ss:$0 sm:$0xff] }
  0x35   :  { %741 = vmatpush3.msra.mxu1 %v139_v49  ;;  %707 = vmatprep.subr.mxu0 %v122_v50  ;;  %v551_v48 = vld [vmem:[%s1256_s1] sm:$0xff] }
  0x36   :  { %742 = vmatprep.subr.mxu1 %v154_v51  ;;  %708 = vmatpush3.msra.mxu0 %v106_v52  ;;  %v619_v49 = vld [vmem:[%s1260_s5] ss:$0 sm:$0xff] }
  0x37   :  { %743 = vmatpush3.msra.mxu1 %v138_v53  ;;  %709 = vmatprep.subr.mxu0 %v121_v54  ;;  %v559_v52 = vmul.f32 %v619_v49, %v551_v48 }
  0x38   :  { %744 = vmatprep.subr.mxu1 %v153_v56  ;;  %710 = vmatpush3.msra.mxu0 %v105_v57  ;;  %v566_v57 = vstv %s1261_s6 }
  0x39   :  { %745 = vmatpush3.msra.mxu1 %v137_v58  ;;  %711 = vmatprep.subr.mxu0 %v120_v59  ;;  %v561_v54 = vsel %vm560_vm1, %v559_v52, 0.0 }
  0x3a   :  { %746 = vmatprep.subr.mxu1 %v152_v60  ;;  %712 = vmatpush3.msra.mxu0 %v104_v61 }
  0x3b   :  { %747 = vmatpush3.msra.mxu1 %v136_v62  ;;  %713 = vmatprep.subr.mxu0 %v119_v63 }
  0x3c   :  { %748 = vmatprep.subr.mxu1 %v151_v0  ;;  %714 = vmatpush3.msra.mxu0 %v103_v1 }
  0x3d   :  { %749 = vmatpush3.msra.mxu1 %v135_v4  ;;  %715 = vmatprep.subr.mxu0 %v118_v7 }
  0x3e   :  { %750 = vmatprep.subr.mxu1 %v150_v8  ;;  %716 = vmatpush3.msra.mxu0 %v102_v9 }
  0x3f   :  { %751 = vmatpush3.msra.mxu1 %v134_v10  ;;  %717 = vmatprep.subr.mxu0 %v117_v11 }
  0x40   :  { %752 = vmatprep.subr.mxu1 %v149_v12  ;;  %718 = vmatpush3.msra.mxu0 %v101_v15 }
  0x41   :  { %753 = vmatpush3.msra.mxu1 %v133_v16  ;;  %719 = vmatprep.subr.mxu0 %v116_v19 }
  0x42   :  { %754 = vmatprep.subr.mxu1 %v148_v20  ;;  %720 = vmatpush3.msra.mxu0 %v100_v21 }
  0x43   :  { %755 = vmatpush3.msra.mxu1 %v132_v55  ;;  %721 = vmatprep.subr.mxu0 %v115_v22 }
  0x44   :  { %756 = vmatprep.subr.mxu1 %v147_v23  ;;  %722 = vmatpush3.msra.mxu0 %v99_v25 }
  0x45   :  { %462 = vmatprep.mubr.f32.mxu0 %v247_v24  ;;  %757 = vmatpush3.msra.mxu1 %v131_v27 }
  0x46   :  { %532 = vmatprep.mubr.f32.mxu1 %v249_v26  ;;  %463 = vmatmul.mubr.f32.vlgmr.msra.gmra.mxu0 %v246_v28 }
  0x47   :  { %533 = vmatmul.mubr.f32.vlgmr.msra.gmra.mxu1 %v248_v29 }
  0xe4   :  { %v653_v30 = vpop.f32.mrf.mxu0 }
  0xe6   :  { %v688_v31 = vpop.f32.mrf.mxu1  ;;  %v654_v32 = vpop.f32.mrf.mxu0 }
  0xe7   :  { %v655_v33 = vadd.f32 %v654_v32, %v653_v30 }
  0xe8   :  { %v689_v35 = vpop.f32.mrf.mxu1 }
  0xe9   :  { %v325_v36 = vadd.f32 %v655_v33, %v617_v34  ;;  %v690_v37 = vadd.f32 %v689_v35, %v688_v31 }
  0xeb   :  { %v395_v42 = vadd.f32 %v690_v37, %v325_v36 }
 0x106   :  { %v723_v38 = vpop.f32.mrf.mxu0 }
 0x107   :  { %v758_v39 = vpop.f32.mrf.mxu1 }
 0x108   :  { %v724_v40 = vpop.f32.mrf.mxu0 }
 0x109   :  { %v759_v41 = vpop.f32.mrf.mxu1  ;;  %v725_v43 = vadd.f32 %v724_v40, %v723_v38 }
 0x10a   :  { %v760_v45 = vadd.f32 %v759_v41, %v758_v39 }
 0x10b   :  { %v465_v44 = vadd.f32 %v725_v43, %v395_v42 }
 0x10d   :  { %v535_v46 = vadd.f32 %v760_v45, %v465_v44 }
 0x10f   :  { %v538_v50 = vmax.f32 %v535_v46, 0.0 }
 0x111   :  { %v546_v51 = vmul.f32 %v618_v47, %v538_v50 }
 0x113   :  { %v548_v53 = vsel %vm547_vm0, %v546_v51, 0.0 }
 0x114   :  { %549 = vadd.xlane.f32.xlu0 %v548_v53 }
 0x118   :  { %562 = vadd.xlane.f32.xlu0 %v561_v54 }
 0x19d   :  { %v550_v56 = vpop.xlane.xlu0 %549 }
 0x1a1   :  { %v563_v58 = vpop.xlane.xlu0 %562 }
 0x1a2   :  { %v564_v59 = vadd.f32 %v563_v58, %v550_v56 }
 0x1a4   :  { %v567_v60 = vadd.f32 %v566_v57, %v564_v59 }
 0x1a6   :  { %v620_v61 = vmul.f32 -1.442695, %v567_v60 }
 0x1a8   :  { %774 = vpow2.f32 %v620_v61 }
 0x1b5   :  { %v775_v62 = vpop.eup %774 }
 0x1b6   :  { %v571_v63 = vadd.f32 1.0, %v775_v62 }
 0x1b8   :  { %776 = vrcp.f32 %v571_v63 }
 0x1c5   :  { %v777_v0 = vpop.eup %776 }
 0x1c6   :  { %575 = vst.msk [vmem:[#allocation3] sm:$0xff] %vm574_vm2, %v777_v0 }
 0x1cd   :  { %v594_v1 = vld [vmem:[#allocation3] sm:$0x3] }
 0x1ce   :  { %595 = vst [vmem:[%s1262_s7] sm:$0x3] %v594_v1 }

</bundles_post_ra>
